<compile_context>
chip_gen: v6e
topology: v6e:2x2x1
jax: 0.10.0
libtpu: 0.0.40
codegen_flags: <defaults>
</compile_context>

<pallas_src>
import functools
import math

import jax
import jax.numpy as jnp
import numpy as np
from jax.experimental import pallas as pl
from jax.experimental.pallas import tpu as pltpu


# --------------------------------------------------------------------------------- kernel
def _fused_autoencoder_kernel(x_ref, masks_ref, *refs, layer_cfgs, b_tile):
    """Fused encoder+decoder forward for one (B_TILE samples) slab.

    x_ref     : (C0_pad, B_TILE*L0)     channel-major, batch*length flattened on lanes, VMEM
    masks_ref : (n_masks, B_TILE*L0)    0/1 per-sample-edge validity masks, VMEM
    refs      : w2_0, b_0, ..., w2_{m-1}, b_{m-1}, o_ref
                  w2_i : (Cout_pad_i, K_i*Cin_pad_i)   im2col-fused taps
                  b_i  : (Cout_pad_i, 1)
                  o_ref: (Cout_pad_last, B_TILE*L_last)
    layer_cfgs: static tuple of (k, pad, l_in, l_out, fast, tap_mask_rows, apply_mish).
    """
    o_ref = refs[-1]
    h = x_ref[...].astype(jnp.float32)                       # (C, B*L): lanes = batch*length

    for idx, (k, pad, l_in, l_out, fast, tap_rows, apply_act) in enumerate(layer_cfgs):
        w2 = refs[2 * idx][...]
        bias = refs[2 * idx + 1][...]
        c_in = h.shape[0]

        if fast:
            # "same"-size layer: K shifted copies built directly on the flat lane axis;
            # per-sample halo = multiply by a precomputed 0/1 edge mask (VPU).
            bl = b_tile * l_in
            hp = h
            if pad > 0:
                z = jnp.zeros((c_in, pad), jnp.float32)
                hp = jnp.concatenate([z, h, z], axis=1)      # (C, B*L + 2*pad)
            cols = []
            for t in range(k):
                col = hp[:, t:t + bl]
                r = tap_rows[t]
                if r >= 0:
                    col = col * masks_ref[r:r + 1, :]
                cols.append(col)
            patch = cols[0] if k == 1 else jnp.concatenate(cols, axis=0)   # (K*C, B*L)
        else:
            # General stride-1 layer (length changes): per-sample halo + im2col.
            pieces = []
            for s in range(b_tile):
                hs = h[:, s * l_in:(s + 1) * l_in]
                if pad > 0:
                    z = jnp.zeros((c_in, pad), jnp.float32)
                    hs = jnp.concatenate([z, hs, z], axis=1)
                taps = [hs[:, t:t + l_out] for t in range(k)]
                pieces.append(taps[0] if k == 1 else jnp.concatenate(taps, axis=0))
            patch = pieces[0] if b_tile == 1 else jnp.concatenate(pieces, axis=1)

        # One MXU matmul per layer: (C_out, K*C_in) @ (K*C_in, B*L_out), f32-accurate.
        acc = jnp.dot(w2, patch, preferred_element_type=jnp.float32,
                      precision=jax.lax.Precision.HIGHEST)
        acc = acc + bias                                     # (C_out, 1) lane-broadcast
        if apply_act:
            # Mish(x) = x * tanh(softplus(x)); logaddexp(x, 0) is a stable softplus (EUP ops).
            acc = acc * jnp.tanh(jnp.logaddexp(acc, 0.0))
        h = acc

    o_ref[...] = h.astype(o_ref.dtype)


# ------------------------------------------------------------------------------- helpers
def _round_up(v, m):
    return (v + m - 1) // m * m


def _lcm(a, b):
    return a * b // math.gcd(a, b)


def _lane_align_batch(length):
    """Smallest batch multiple b such that b*length is 128-lane aligned."""
    return 128 // math.gcd(length, 128)


def _choose_batch_tile(n, l0, l_final):
    b_align = _lcm(_lane_align_batch(l0), _lane_align_batch(l_final))
    if n <= b_align:
        return n                                  # one full-extent slab (grid = 1)
    # Aim for ~1024 lanes per block but keep >= 2 grid steps (v7x has 2 TensorCores).
    target = max(b_align, (max(1, 1024 // l0) // b_align) * b_align)
    cap = max(b_align, (n // (2 * b_align)) * b_align)
    return min(target, cap)


def _pick_vmem_limit_bytes():
    """~75% of physical VMEM (96 MiB on v5e/v6e, 48 MiB on v7x); safe fallback."""
    try:
        cap = int(pltpu.get_tpu_info().vmem_capacity_bytes)
        return min(cap * 3 // 4, 100 * 1024 * 1024)
    except Exception:
        return 48 * 1024 * 1024


def _prepare_layers(enc_params, dec_params, encoder_convs, decoder_convs, l0):
    """Rewrite every layer as a stride-1 cross-correlation with an im2col-fused,
    channel-padded weight:  w2 : (C_out_pad, K*C_in_pad),  bias : (C_out_pad, 1)."""
    raw = []   # (taps (K, C_out, C_in), bias, k, effective_pad, apply_mish)

    for (w, b), cfg in zip(enc_params, encoder_convs):
        # TODO(synk): only stride=1 convs are implemented in the Pallas path.
        assert cfg.get("stride", 1) == 1
        raw.append((jnp.transpose(w, (2, 0, 1)), b, cfg["kernel_size"],
                    cfg["padding"], True))

    n_dec = len(dec_params)
    for i, ((w, b), cfg) in enumerate(zip(dec_params, decoder_convs)):
        assert cfg.get("stride", 1) == 1
        k = cfg["kernel_size"]
        # ConvTranspose1d (stride=1) == Conv1d with flipped taps, swapped channels, pad K-1-p.
        taps = jnp.flip(jnp.transpose(w, (2, 1, 0)), axis=0)
        raw.append((taps, b, k, k - 1 - cfg["padding"], i < n_dec - 1))

    layer_arrays, layer_cfgs = [], []
    mask_offsets = {}                      # tap offset d -> mask row index
    l_cur = l0
    c_in_pad0 = _round_up(raw[0][0].shape[2], 8)
    c_in_pad = c_in_pad0
    c_out_real = c_out_pad = None
    for taps, b, k, pad, act in raw:
        _, c_out, c_in = taps.shape
        c_out_real = c_out
        c_out_pad = _round_up(c_out, 8)
        w2 = jnp.zeros((c_out_pad, k * c_in_pad), jnp.float32)
        for t in range(k):
            w2 = w2.at[:c_out, t * c_in_pad:t * c_in_pad + c_in].set(taps[t])
        b2 = jnp.zeros((c_out_pad, 1), jnp.float32).at[:c_out, 0].set(b)
        layer_arrays += [w2, b2]

        l_out = l_cur + 2 * pad - (k - 1)
        fast = (l_out == l_cur) and (l_cur == l0)
        tap_rows = []
        if fast:
            for t in range(k):
                d = t - pad
                if d == 0:
                    tap_rows.append(-1)
                else:
                    mask_offsets.setdefault(d, len(mask_offsets))
                    tap_rows.append(mask_offsets[d])
        layer_cfgs.append((k, pad, l_cur, l_out, fast, tuple(tap_rows), act))
        l_cur, c_in_pad = l_out, c_out_pad

    return (layer_arrays, tuple(layer_cfgs), mask_offsets,
            c_in_pad0, c_out_pad, c_out_real, l_cur)


# ------------------------------------------------------------------------------- wrapper
def simple_1d_autoencoder_forward(x_ncl, enc_params, dec_params,
                                  encoder_convs, decoder_convs):
    """x_ncl: (N, C, L) float32 (PyTorch layout).  Returns (N, C_out, L_out)."""
    n, c0, l0 = x_ncl.shape
    (layer_arrays, layer_cfgs, mask_offsets,
     c0_pad, c_out_pad, c_out_real, l_final) = _prepare_layers(
        enc_params, dec_params, encoder_convs, decoder_convs, l0)

    # TODO(synk): very long sequences (L ~> 1e5 on v7x's 64 MiB VMEM) would additionally need
    # an L-axis grid with a receptive-field halo; the full length is kept per block here.
    b_tile = _choose_batch_tile(n, l0, l_final)
    n_pad = (n + b_tile - 1) // b_tile * b_tile
    grid = (n_pad // b_tile,)

    # NCL -> channel-major with batch*length flattened onto the lane axis (layout plumbing).
    xp = jnp.pad(x_ncl, ((0, n_pad - n), (0, c0_pad - c0), (0, 0)))
    x_flat = jnp.transpose(xp, (1, 0, 2)).reshape(c0_pad, n_pad * l0)

    # Per-sample conv-halo validity masks on the flat lane axis (one row per tap offset).
    n_masks = max(1, len(mask_offsets))
    masks_np = np.ones((n_masks, n_pad * l0), np.float32)
    jj = np.arange(l0)
    for d, row in mask_offsets.items():
        valid = ((jj + d) >= 0) & ((jj + d) < l0)
        masks_np[row] = np.tile(valid.astype(np.float32), n_pad)
    masks = jnp.asarray(masks_np)

    kernel = functools.partial(_fused_autoencoder_kernel,
                               layer_cfgs=layer_cfgs, b_tile=b_tile)

    in_specs = [pl.BlockSpec((c0_pad, b_tile * l0), lambda g: (0, g)),
                pl.BlockSpec((n_masks, b_tile * l0), lambda g: (0, g))]
    for arr in layer_arrays:                       # weights/bias: constant block index
        in_specs.append(pl.BlockSpec(arr.shape, lambda g: (0, 0)))

    out_flat = pl.pallas_call(
        kernel,
        out_shape=jax.ShapeDtypeStruct((c_out_pad, n_pad * l_final), x_ncl.dtype),
        grid=grid,
        in_specs=in_specs,
        out_specs=pl.BlockSpec((c_out_pad, b_tile * l_final), lambda g: (0, g)),
        compiler_params=pltpu.CompilerParams(
            dimension_semantics=("parallel",),
            vmem_limit_bytes=_pick_vmem_limit_bytes()),
    )(x_flat, masks, *layer_arrays)

    out = out_flat.reshape(c_out_pad, n_pad, l_final)
    return jnp.transpose(out, (1, 0, 2))[:n, :c_out_real, :]


# ------------------------------------------------------------------- parameters (PyTorch-like)
def _init_conv_params(key, c_in, c_out, k, transpose=False):
    """Deterministic init mimicking PyTorch's uniform(-bound, bound)."""
    kw, kb = jax.random.split(key)
    bound = 1.0 / np.sqrt(c_in * k)
    if transpose:   # ConvTranspose1d weight shape: (C_in, C_out, K)
        w = jax.random.uniform(kw, (c_in, c_out, k), jnp.float32, -bound, bound)
    else:           # Conv1d weight shape: (C_out, C_in, K)
        w = jax.random.uniform(kw, (c_out, c_in, k), jnp.float32, -bound, bound)
    b = jax.random.uniform(kb, (c_out,), jnp.float32, -bound, bound)
    return w, b


# ------------------------------------------------------------------------ numpy reference
def _ref_mish(x):
    return x * np.tanh(np.log1p(np.exp(x)))


def _ref_conv1d(x, w, b, pad):
    n, c_in, l = x.shape
    c_out, _, k = w.shape
    l_out = l + 2 * pad - k + 1
    xp = np.pad(x, ((0, 0), (0, 0), (pad, pad)))
    y = np.zeros((n, c_out, l_out), np.float64)
    for pos in range(l_out):
        y[:, :, pos] = np.einsum("nck,ock->no", xp[:, :, pos:pos + k], w)
    return y + b[None, :, None]


def _ref_conv_transpose1d(x, w, b, pad):
    n, c_in, l = x.shape
    _, c_out, k = w.shape
    full = np.zeros((n, c_out, (l - 1) + k), np.float64)
    for i in range(l):
        for kk in range(k):
            full[:, :, i + kk] += np.einsum("nc,cd->nd", x[:, :, i], w[:, :, kk])
    y = full[:, :, pad: full.shape[2] - pad]
    return y + b[None, :, None]


def _ref_forward(x, enc_params, dec_params, encoder_convs, decoder_convs):
    y = np.asarray(x, np.float64)
    for (w, b), cfg in zip(enc_params, encoder_convs):
        y = _ref_mish(_ref_conv1d(y, np.asarray(w), np.asarray(b), cfg["padding"]))
    n_dec = len(dec_params)
    for i, ((w, b), cfg) in enumerate(zip(dec_params, decoder_convs)):
        y = _ref_conv_transpose1d(y, np.asarray(w), np.asarray(b), cfg["padding"])
        if i < n_dec - 1:
            y = _ref_mish(y)
    return y


# --------------------------------------------------------------------------------------- main
if __name__ == "__main__":
    encoder_convs = [
        dict(in_channels=4, out_channels=8, kernel_size=3, stride=1, padding=1),
        dict(in_channels=8, out_channels=16, kernel_size=3, stride=1, padding=1),
    ]
    decoder_convs = [
        dict(in_channels=16, out_channels=8, kernel_size=3, stride=1, padding=1),
        dict(in_channels=8, out_channels=4, kernel_size=3, stride=1, padding=1),
    ]

    key = jax.random.PRNGKey(0)
    key, kx = jax.random.split(key)
    x = jax.random.normal(kx, (2, 4, 16), jnp.float32)       # (N, C, L)

    enc_params, dec_params = [], []
    for cfg in encoder_convs:
        key, kp = jax.random.split(key)
        enc_params.append(_init_conv_params(
            kp, cfg["in_channels"], cfg["out_channels"], cfg["kernel_size"]))
    for cfg in decoder_convs:
        key, kp = jax.random.split(key)
        dec_params.append(_init_conv_params(
            kp, cfg["in_channels"], cfg["out_channels"], cfg["kernel_size"],
            transpose=True))

    fwd = jax.jit(functools.partial(
        simple_1d_autoencoder_forward,
        encoder_convs=encoder_convs, decoder_convs=decoder_convs))
    out = jax.block_until_ready(fwd(x, enc_params, dec_params))

    ref = _ref_forward(np.asarray(x), enc_params, dec_params,
                       encoder_convs, decoder_convs)
    # Precision.HIGHEST MXU dots restore ~f32 parity with PyTorch across all 4 layers.
    np.testing.assert_allclose(np.asarray(out), ref, rtol=5e-4, atol=5e-4)

    print("KERNEL_OK")
</pallas_src>

<mosaic_0001>
module attributes {stable_mosaic.version = 11 : i64} {
  func.func @_fused_autoencoder_kernel(%arg0: i32, %arg1: memref<8x32xf32, #tpu.memory_space<vmem>>, %arg2: memref<2x32xf32, #tpu.memory_space<vmem>>, %arg3: memref<8x24xf32, #tpu.memory_space<vmem>>, %arg4: memref<8x1xf32, #tpu.memory_space<vmem>>, %arg5: memref<16x24xf32, #tpu.memory_space<vmem>>, %arg6: memref<16x1xf32, #tpu.memory_space<vmem>>, %arg7: memref<8x48xf32, #tpu.memory_space<vmem>>, %arg8: memref<8x1xf32, #tpu.memory_space<vmem>>, %arg9: memref<8x24xf32, #tpu.memory_space<vmem>>, %arg10: memref<8x1xf32, #tpu.memory_space<vmem>>, %arg11: memref<8x32xf32, #tpu.memory_space<vmem>>) attributes {dimension_semantics = [#tpu.dimension_semantics<parallel>], iteration_bounds = array<i64: 1>, scalar_prefetch = 0 : i64, scratch_operands = 0 : i64, tpu.core_type = #tpu.core_type<tc>, window_params = [{transform_indices = @transform_0, window_bounds = array<i64: 8, 32>}, {transform_indices = @transform_1, window_bounds = array<i64: 2, 32>}, {pipeline_mode = #tpu.pipeline_mode<synchronous>, transform_indices = @transform_2, window_bounds = array<i64: 8, 24>}, {pipeline_mode = #tpu.pipeline_mode<synchronous>, transform_indices = @transform_3, window_bounds = array<i64: 8, 1>}, {pipeline_mode = #tpu.pipeline_mode<synchronous>, transform_indices = @transform_4, window_bounds = array<i64: 16, 24>}, {pipeline_mode = #tpu.pipeline_mode<synchronous>, transform_indices = @transform_5, window_bounds = array<i64: 16, 1>}, {pipeline_mode = #tpu.pipeline_mode<synchronous>, transform_indices = @transform_6, window_bounds = array<i64: 8, 48>}, {pipeline_mode = #tpu.pipeline_mode<synchronous>, transform_indices = @transform_7, window_bounds = array<i64: 8, 1>}, {pipeline_mode = #tpu.pipeline_mode<synchronous>, transform_indices = @transform_8, window_bounds = array<i64: 8, 24>}, {pipeline_mode = #tpu.pipeline_mode<synchronous>, transform_indices = @transform_9, window_bounds = array<i64: 8, 1>}, {transform_indices = @transform_10, window_bounds = array<i64: 8, 32>}]} {
    %c0 = arith.constant 0 : index
    %c0_0 = arith.constant 0 : index
    %0 = vector.load %arg1[%c0, %c0_0] : memref<8x32xf32, #tpu.memory_space<vmem>>, vector<8x32xf32>
    %c0_1 = arith.constant 0 : index
    %c0_2 = arith.constant 0 : index
    %1 = vector.load %arg3[%c0_1, %c0_2] : memref<8x24xf32, #tpu.memory_space<vmem>>, vector<8x24xf32>
    %c0_3 = arith.constant 0 : index
    %c0_4 = arith.constant 0 : index
    %2 = vector.load %arg4[%c0_3, %c0_4] : memref<8x1xf32, #tpu.memory_space<vmem>>, vector<8x1xf32>
    %cst = arith.constant 0.000000e+00 : f32
    %3 = vector.broadcast %cst : f32 to vector<8x1xf32>
    %4 = tpu.concatenate %3, %0, %3 in 1 : vector<8x1xf32>, vector<8x32xf32>, vector<8x1xf32> -> vector<8x34xf32>
    %5 = vector.extract_strided_slice %4 {offsets = [0, 0], sizes = [8, 32], strides = [1, 1]} : vector<8x34xf32> to vector<8x32xf32>
    %c0_5 = arith.constant 0 : index
    %c0_6 = arith.constant 0 : index
    %6 = vector.load %arg2[%c0_5, %c0_6] : memref<2x32xf32, #tpu.memory_space<vmem>>, vector<1x32xf32>
    %7 = vector.broadcast %6 : vector<1x32xf32> to vector<8x32xf32>
    %8 = arith.mulf %5, %7 : vector<8x32xf32>
    %9 = vector.extract_strided_slice %4 {offsets = [0, 1], sizes = [8, 32], strides = [1, 1]} : vector<8x34xf32> to vector<8x32xf32>
    %10 = vector.extract_strided_slice %4 {offsets = [0, 2], sizes = [8, 32], strides = [1, 1]} : vector<8x34xf32> to vector<8x32xf32>
    %c1 = arith.constant 1 : index
    %c0_7 = arith.constant 0 : index
    %11 = vector.load %arg2[%c1, %c0_7] : memref<2x32xf32, #tpu.memory_space<vmem>>, vector<1x32xf32>
    %12 = vector.broadcast %11 : vector<1x32xf32> to vector<8x32xf32>
    %13 = arith.mulf %10, %12 : vector<8x32xf32>
    %14 = tpu.concatenate %8, %9, %13 in 0 : vector<8x32xf32>, vector<8x32xf32>, vector<8x32xf32> -> vector<24x32xf32>
    %cst_8 = arith.constant dense<0.000000e+00> : vector<8x32xf32>
    %15 = tpu.matmul %1, %14, %cst_8 {dimension_numbers = #tpu.dot_dimension_numbers<[1], [0], [0], [1], [0, 0, 1, 1], [], []>, precision = #tpu.contract_precision<fp32>} : vector<8x24xf32>, vector<24x32xf32>, vector<8x32xf32> -> vector<8x32xf32>
    %16 = vector.broadcast %2 : vector<8x1xf32> to vector<8x32xf32>
    %17 = arith.addf %15, %16 : vector<8x32xf32>
    %cst_9 = arith.constant 0.000000e+00 : f32
    %18 = vector.broadcast %cst_9 : f32 to vector<8x32xf32>
    %19 = arith.maximumf %17, %18 : vector<8x32xf32>
    %20 = vector.broadcast %cst_9 : f32 to vector<8x32xf32>
    %21 = arith.subf %17, %20 : vector<8x32xf32>
    %22 = arith.cmpf one, %21, %21 : vector<8x32xf32>
    %23 = vector.broadcast %cst_9 : f32 to vector<8x32xf32>
    %24 = arith.addf %17, %23 : vector<8x32xf32>
    %25 = math.absf %21 : vector<8x32xf32>
    %cst_10 = arith.constant 0.000000e+00 : f32
    %26 = vector.broadcast %cst_10 : f32 to vector<8x32xf32>
    %27 = arith.subf %26, %25 : vector<8x32xf32>
    %28 = math.exp %27 : vector<8x32xf32>
    %29 = math.log1p %28 : vector<8x32xf32>
    %30 = arith.addf %19, %29 : vector<8x32xf32>
    %31 = arith.select %22, %24, %30 : vector<8x32xi1>, vector<8x32xf32>
    %32 = math.tanh %31 : vector<8x32xf32>
    %33 = arith.mulf %17, %32 : vector<8x32xf32>
    %c0_11 = arith.constant 0 : index
    %c0_12 = arith.constant 0 : index
    %34 = vector.load %arg5[%c0_11, %c0_12] : memref<16x24xf32, #tpu.memory_space<vmem>>, vector<16x24xf32>
    %c0_13 = arith.constant 0 : index
    %c0_14 = arith.constant 0 : index
    %35 = vector.load %arg6[%c0_13, %c0_14] : memref<16x1xf32, #tpu.memory_space<vmem>>, vector<16x1xf32>
    %cst_15 = arith.constant 0.000000e+00 : f32
    %36 = vector.broadcast %cst_15 : f32 to vector<8x1xf32>
    %37 = tpu.concatenate %36, %33, %36 in 1 : vector<8x1xf32>, vector<8x32xf32>, vector<8x1xf32> -> vector<8x34xf32>
    %38 = vector.extract_strided_slice %37 {offsets = [0, 0], sizes = [8, 32], strides = [1, 1]} : vector<8x34xf32> to vector<8x32xf32>
    %c0_16 = arith.constant 0 : index
    %c0_17 = arith.constant 0 : index
    %39 = vector.load %arg2[%c0_16, %c0_17] : memref<2x32xf32, #tpu.memory_space<vmem>>, vector<1x32xf32>
    %40 = vector.broadcast %39 : vector<1x32xf32> to vector<8x32xf32>
    %41 = arith.mulf %38, %40 : vector<8x32xf32>
    %42 = vector.extract_strided_slice %37 {offsets = [0, 1], sizes = [8, 32], strides = [1, 1]} : vector<8x34xf32> to vector<8x32xf32>
    %43 = vector.extract_strided_slice %37 {offsets = [0, 2], sizes = [8, 32], strides = [1, 1]} : vector<8x34xf32> to vector<8x32xf32>
    %c1_18 = arith.constant 1 : index
    %c0_19 = arith.constant 0 : index
    %44 = vector.load %arg2[%c1_18, %c0_19] : memref<2x32xf32, #tpu.memory_space<vmem>>, vector<1x32xf32>
    %45 = vector.broadcast %44 : vector<1x32xf32> to vector<8x32xf32>
    %46 = arith.mulf %43, %45 : vector<8x32xf32>
    %47 = tpu.concatenate %41, %42, %46 in 0 : vector<8x32xf32>, vector<8x32xf32>, vector<8x32xf32> -> vector<24x32xf32>
    %cst_20 = arith.constant dense<0.000000e+00> : vector<16x32xf32>
    %48 = tpu.matmul %34, %47, %cst_20 {dimension_numbers = #tpu.dot_dimension_numbers<[1], [0], [0], [1], [0, 0, 1, 1], [], []>, precision = #tpu.contract_precision<fp32>} : vector<16x24xf32>, vector<24x32xf32>, vector<16x32xf32> -> vector<16x32xf32>
    %49 = vector.broadcast %35 : vector<16x1xf32> to vector<16x32xf32>
    %50 = arith.addf %48, %49 : vector<16x32xf32>
    %cst_21 = arith.constant 0.000000e+00 : f32
    %51 = vector.broadcast %cst_21 : f32 to vector<16x32xf32>
    %52 = arith.maximumf %50, %51 : vector<16x32xf32>
    %53 = vector.broadcast %cst_21 : f32 to vector<16x32xf32>
    %54 = arith.subf %50, %53 : vector<16x32xf32>
    %55 = arith.cmpf one, %54, %54 : vector<16x32xf32>
    %56 = vector.broadcast %cst_21 : f32 to vector<16x32xf32>
    %57 = arith.addf %50, %56 : vector<16x32xf32>
    %58 = math.absf %54 : vector<16x32xf32>
    %cst_22 = arith.constant 0.000000e+00 : f32
    %59 = vector.broadcast %cst_22 : f32 to vector<16x32xf32>
    %60 = arith.subf %59, %58 : vector<16x32xf32>
    %61 = math.exp %60 : vector<16x32xf32>
    %62 = math.log1p %61 : vector<16x32xf32>
    %63 = arith.addf %52, %62 : vector<16x32xf32>
    %64 = arith.select %55, %57, %63 : vector<16x32xi1>, vector<16x32xf32>
    %65 = math.tanh %64 : vector<16x32xf32>
    %66 = arith.mulf %50, %65 : vector<16x32xf32>
    %c0_23 = arith.constant 0 : index
    %c0_24 = arith.constant 0 : index
    %67 = vector.load %arg7[%c0_23, %c0_24] : memref<8x48xf32, #tpu.memory_space<vmem>>, vector<8x48xf32>
    %c0_25 = arith.constant 0 : index
    %c0_26 = arith.constant 0 : index
    %68 = vector.load %arg8[%c0_25, %c0_26] : memref<8x1xf32, #tpu.memory_space<vmem>>, vector<8x1xf32>
    %cst_27 = arith.constant 0.000000e+00 : f32
    %69 = vector.broadcast %cst_27 : f32 to vector<16x1xf32>
    %70 = tpu.concatenate %69, %66, %69 in 1 : vector<16x1xf32>, vector<16x32xf32>, vector<16x1xf32> -> vector<16x34xf32>
    %71 = vector.extract_strided_slice %70 {offsets = [0, 0], sizes = [16, 32], strides = [1, 1]} : vector<16x34xf32> to vector<16x32xf32>
    %c0_28 = arith.constant 0 : index
    %c0_29 = arith.constant 0 : index
    %72 = vector.load %arg2[%c0_28, %c0_29] : memref<2x32xf32, #tpu.memory_space<vmem>>, vector<1x32xf32>
    %73 = vector.broadcast %72 : vector<1x32xf32> to vector<16x32xf32>
    %74 = arith.mulf %71, %73 : vector<16x32xf32>
    %75 = vector.extract_strided_slice %70 {offsets = [0, 1], sizes = [16, 32], strides = [1, 1]} : vector<16x34xf32> to vector<16x32xf32>
    %76 = vector.extract_strided_slice %70 {offsets = [0, 2], sizes = [16, 32], strides = [1, 1]} : vector<16x34xf32> to vector<16x32xf32>
    %c1_30 = arith.constant 1 : index
    %c0_31 = arith.constant 0 : index
    %77 = vector.load %arg2[%c1_30, %c0_31] : memref<2x32xf32, #tpu.memory_space<vmem>>, vector<1x32xf32>
    %78 = vector.broadcast %77 : vector<1x32xf32> to vector<16x32xf32>
    %79 = arith.mulf %76, %78 : vector<16x32xf32>
    %80 = tpu.concatenate %74, %75, %79 in 0 : vector<16x32xf32>, vector<16x32xf32>, vector<16x32xf32> -> vector<48x32xf32>
    %cst_32 = arith.constant dense<0.000000e+00> : vector<8x32xf32>
    %81 = tpu.matmul %67, %80, %cst_32 {dimension_numbers = #tpu.dot_dimension_numbers<[1], [0], [0], [1], [0, 0, 1, 1], [], []>, precision = #tpu.contract_precision<fp32>} : vector<8x48xf32>, vector<48x32xf32>, vector<8x32xf32> -> vector<8x32xf32>
    %82 = vector.broadcast %68 : vector<8x1xf32> to vector<8x32xf32>
    %83 = arith.addf %81, %82 : vector<8x32xf32>
    %cst_33 = arith.constant 0.000000e+00 : f32
    %84 = vector.broadcast %cst_33 : f32 to vector<8x32xf32>
    %85 = arith.maximumf %83, %84 : vector<8x32xf32>
    %86 = vector.broadcast %cst_33 : f32 to vector<8x32xf32>
    %87 = arith.subf %83, %86 : vector<8x32xf32>
    %88 = arith.cmpf one, %87, %87 : vector<8x32xf32>
    %89 = vector.broadcast %cst_33 : f32 to vector<8x32xf32>
    %90 = arith.addf %83, %89 : vector<8x32xf32>
    %91 = math.absf %87 : vector<8x32xf32>
    %cst_34 = arith.constant 0.000000e+00 : f32
    %92 = vector.broadcast %cst_34 : f32 to vector<8x32xf32>
    %93 = arith.subf %92, %91 : vector<8x32xf32>
    %94 = math.exp %93 : vector<8x32xf32>
    %95 = math.log1p %94 : vector<8x32xf32>
    %96 = arith.addf %85, %95 : vector<8x32xf32>
    %97 = arith.select %88, %90, %96 : vector<8x32xi1>, vector<8x32xf32>
    %98 = math.tanh %97 : vector<8x32xf32>
    %99 = arith.mulf %83, %98 : vector<8x32xf32>
    %c0_35 = arith.constant 0 : index
    %c0_36 = arith.constant 0 : index
    %100 = vector.load %arg9[%c0_35, %c0_36] : memref<8x24xf32, #tpu.memory_space<vmem>>, vector<8x24xf32>
    %c0_37 = arith.constant 0 : index
    %c0_38 = arith.constant 0 : index
    %101 = vector.load %arg10[%c0_37, %c0_38] : memref<8x1xf32, #tpu.memory_space<vmem>>, vector<8x1xf32>
    %cst_39 = arith.constant 0.000000e+00 : f32
    %102 = vector.broadcast %cst_39 : f32 to vector<8x1xf32>
    %103 = tpu.concatenate %102, %99, %102 in 1 : vector<8x1xf32>, vector<8x32xf32>, vector<8x1xf32> -> vector<8x34xf32>
    %104 = vector.extract_strided_slice %103 {offsets = [0, 0], sizes = [8, 32], strides = [1, 1]} : vector<8x34xf32> to vector<8x32xf32>
    %c0_40 = arith.constant 0 : index
    %c0_41 = arith.constant 0 : index
    %105 = vector.load %arg2[%c0_40, %c0_41] : memref<2x32xf32, #tpu.memory_space<vmem>>, vector<1x32xf32>
    %106 = vector.broadcast %105 : vector<1x32xf32> to vector<8x32xf32>
    %107 = arith.mulf %104, %106 : vector<8x32xf32>
    %108 = vector.extract_strided_slice %103 {offsets = [0, 1], sizes = [8, 32], strides = [1, 1]} : vector<8x34xf32> to vector<8x32xf32>
    %109 = vector.extract_strided_slice %103 {offsets = [0, 2], sizes = [8, 32], strides = [1, 1]} : vector<8x34xf32> to vector<8x32xf32>
    %c1_42 = arith.constant 1 : index
    %c0_43 = arith.constant 0 : index
    %110 = vector.load %arg2[%c1_42, %c0_43] : memref<2x32xf32, #tpu.memory_space<vmem>>, vector<1x32xf32>
    %111 = vector.broadcast %110 : vector<1x32xf32> to vector<8x32xf32>
    %112 = arith.mulf %109, %111 : vector<8x32xf32>
    %113 = tpu.concatenate %107, %108, %112 in 0 : vector<8x32xf32>, vector<8x32xf32>, vector<8x32xf32> -> vector<24x32xf32>
    %cst_44 = arith.constant dense<0.000000e+00> : vector<8x32xf32>
    %114 = tpu.matmul %100, %113, %cst_44 {dimension_numbers = #tpu.dot_dimension_numbers<[1], [0], [0], [1], [0, 0, 1, 1], [], []>, precision = #tpu.contract_precision<fp32>} : vector<8x24xf32>, vector<24x32xf32>, vector<8x32xf32> -> vector<8x32xf32>
    %115 = vector.broadcast %101 : vector<8x1xf32> to vector<8x32xf32>
    %116 = arith.addf %114, %115 : vector<8x32xf32>
    %c0_45 = arith.constant 0 : index
    %c0_46 = arith.constant 0 : index
    %117 = vector.load %arg11[%c0_45, %c0_46] : memref<8x32xf32, #tpu.memory_space<vmem>>, vector<8x32xf32>
    tpu.vector_store %arg11[%c0_45, %c0_46], %116 {strides = array<i32>} : memref<8x32xf32, #tpu.memory_space<vmem>>, vector<8x32xf32>,
    return
  }
  func.func @transform_0(%arg0: i32) -> (i32, i32) {
    %c0_i32 = arith.constant 0 : i32
    %c0_i32_0 = arith.constant 0 : i32
    return %c0_i32, %arg0 : i32, i32
  }
  func.func @transform_1(%arg0: i32) -> (i32, i32) {
    %c0_i32 = arith.constant 0 : i32
    %c0_i32_0 = arith.constant 0 : i32
    return %c0_i32, %arg0 : i32, i32
  }
  func.func @transform_2(%arg0: i32) -> (i32, i32) {
    %c0_i32 = arith.constant 0 : i32
    %c0_i32_0 = arith.constant 0 : i32
    %c0_i32_1 = arith.constant 0 : i32
    return %c0_i32, %c0_i32_0 : i32, i32
  }
  func.func @transform_3(%arg0: i32) -> (i32, i32) {
    %c0_i32 = arith.constant 0 : i32
    %c0_i32_0 = arith.constant 0 : i32
    %c0_i32_1 = arith.constant 0 : i32
    return %c0_i32, %c0_i32_0 : i32, i32
  }
  func.func @transform_4(%arg0: i32) -> (i32, i32) {
    %c0_i32 = arith.constant 0 : i32
    %c0_i32_0 = arith.constant 0 : i32
    %c0_i32_1 = arith.constant 0 : i32
    return %c0_i32, %c0_i32_0 : i32, i32
  }
  func.func @transform_5(%arg0: i32) -> (i32, i32) {
    %c0_i32 = arith.constant 0 : i32
    %c0_i32_0 = arith.constant 0 : i32
    %c0_i32_1 = arith.constant 0 : i32
    return %c0_i32, %c0_i32_0 : i32, i32
  }
  func.func @transform_6(%arg0: i32) -> (i32, i32) {
    %c0_i32 = arith.constant 0 : i32
    %c0_i32_0 = arith.constant 0 : i32
    %c0_i32_1 = arith.constant 0 : i32
    return %c0_i32, %c0_i32_0 : i32, i32
  }
  func.func @transform_7(%arg0: i32) -> (i32, i32) {
    %c0_i32 = arith.constant 0 : i32
    %c0_i32_0 = arith.constant 0 : i32
    %c0_i32_1 = arith.constant 0 : i32
    return %c0_i32, %c0_i32_0 : i32, i32
  }
  func.func @transform_8(%arg0: i32) -> (i32, i32) {
    %c0_i32 = arith.constant 0 : i32
    %c0_i32_0 = arith.constant 0 : i32
    %c0_i32_1 = arith.constant 0 : i32
    return %c0_i32, %c0_i32_0 : i32, i32
  }
  func.func @transform_9(%arg0: i32) -> (i32, i32) {
    %c0_i32 = arith.constant 0 : i32
    %c0_i32_0 = arith.constant 0 : i32
    %c0_i32_1 = arith.constant 0 : i32
    return %c0_i32, %c0_i32_0 : i32, i32
  }
  func.func @transform_10(%arg0: i32) -> (i32, i32) {
    %c0_i32 = arith.constant 0 : i32
    %c0_i32_0 = arith.constant 0 : i32
    return %c0_i32, %arg0 : i32, i32
  }
}

</mosaic_0001>

<bundles_post_ra>
// kernel: simple_1d_autoencoder_forward.1
= control target key start
LH: loop header
LB: loop body
LE: loop exit
PB: predicated region body
PF: predicated region fallthrough
CT: control target
= control target key end

     0   :  { %s2647_s15 = smov 1   ;;  %s2648_s18 = smov 2   ;;  %v2649_v2 = vmov 0.0   ;;  %vm42_vm0 = vcmask 7168   ;;  %vm44_vm1 = vcmask 269312   ;;  %vm2650_vm2 = vmmov 0   ;;  %s3041_s0 = inlined_call_operand.vmem [shape: f32[8,32], index: 0, kind: input, shape index: {}]   ;;  %s3042_s1 = inlined_call_operand.vmem [shape: f32[2,32], index: 1, kind: input, shape index: {}]   ;;  %s3043_s3 = inlined_call_operand.vmem [shape: f32[8,1], index: 3, kind: input, shape index: {}]   ;;  %s3044_s2 = inlined_call_operand.vmem [shape: f32[8,24], index: 2, kind: input, shape index: {}]   ;;  %s3045_s4 = inlined_call_operand.vmem [shape: f32[16,24], index: 4, kind: input, shape index: {}]   ;;  %s3046_s5 = inlined_call_operand.vmem [shape: f32[16,1], index: 5, kind: input, shape index: {}]   ;;  %s3047_s7 = inlined_call_operand.vmem [shape: f32[8,1], index: 7, kind: input, shape index: {}]   ;;  %s3048_s6 = inlined_call_operand.vmem [shape: f32[8,48], index: 6, kind: input, shape index: {}]   ;;  %s3049_s9 = inlined_call_operand.vmem [shape: f32[8,1], index: 9, kind: input, shape index: {}]   ;;  %s3050_s8 = inlined_call_operand.vmem [shape: f32[8,24], index: 8, kind: input, shape index: {}]   ;;  %s3051_s10 = inlined_call_operand.vmem [shape: f32[8,32], index: 10, kind: output, shape index: {}]  }
   0x1   :  { %v35_v0 = vld [vmem:[%s3041_s0] sm:$0xff]  ;;  %2362 = vmatprep.subr.mxu0 %v2649_v2  ;;  %2371 = vmatprep.subr.mxu1 %v2649_v2  ;;  %s2651_s0 = smov 126   ;;  %s2652_s19 = smov 127   ;;  %v2653_v8 = vmov 0   ;;  %vm75_vm3 = vcmask 195584   ;;  %vm1201_vm10 = vcmask 392192  }
   0x2   :  { %39 = vrot.lane.b32.xlu0 %v35_v0, %s2647_s15  ;;  %v2241_v1 = vld [vmem:[%s3042_s1 + $0x1] ss:$0 sm:$0xff]  ;;  %2368 = vmatprep.mubr.msk.f32.mxu0 %vm2650_vm2, %v2649_v2  ;;  %v2741_v13 = vld [vmem:[%s3042_s1] ss:$0 sm:$0xff]  ;;  %vm2234_vm13 = vcmask 261120  }
   0x3   :  { %2377 = vmatprep.mubr.msk.f32.mxu1 %vm2650_vm2, %v2649_v2  ;;  %2621 = vset.pattern.permute.xlu0 %v2653_v8  ;;  %v37_v9 = vld [vmem:[%s3043_s3] sm:$0xff] }
   0x4   :  { %2622 = vset.pattern.permute.xlu1 %v2653_v8  ;;  %v36_v10 = vld [vmem:[%s3044_s2] sm:$0xff] }
   0x5   :  { %v77_v11 = vsel %vm75_vm3, %v36_v10, 0  ;;  %v571_v10 = vld [vmem:[%s3045_s4] sm:$0xff] }
   0x6   :  { %58 = vrot.lane.b32.xlu0 %v2241_v1, %s2648_s18  ;;  %v2736_v12 = vand.u32 4294901760, %v77_v11 }
   0x8   :  { %v148_v14 = vsub.f32 %v77_v11, %v2736_v12  ;;  %v602_v11 = vsel %vm75_vm3, %v571_v10, 0 }
   0xa   :  { %72 = vperm.xlu0 %2621, %v37_v9   ;;  %v149_v16 = vand.u32 4294901760, %v148_v14 }
   0xc   :  { %v150_v20 = vsub.f32 %v148_v14, %v149_v16 }
   0xe   :  { %v151_v26 = vand.u32 4294901760, %v150_v20 }
  0x74   :  { %v40_v3 = vpop.permute.xlu0 %39 }
  0x75   :  { %v43_v4 = vsel %vm42_vm0, 0.0, %v40_v3 }
  0x76   :  { %v45_v5 = vsel %vm44_vm1, %v43_v4, 0.0 }
  0x77   :  { %v51_v15 = vmul.f32 %v2741_v13, %v45_v5 }
  0x78   :  { %v2724_v6 = vpop.permute.xlu0 %58 }
  0x79   :  { %v61_v7 = vmul.f32 %v2724_v6, %v45_v5  ;;  %v112_v17 = vand.u32 4294901760, %v51_v15 }
  0x7b   :  { %67 = vrot.lane.b32.xlu1 %v61_v7, %s2651_s0  ;;  %v199_v21 = vsub.f32 %v51_v15, %v112_v17 }
  0x7d   :  { %v200_v29 = vand.u32 4294901760, %v199_v21 }
  0x7f   :  { %63 = vrot.lane.b32.xlu1 %v45_v5, %s2652_s19  ;;  %v201_v33 = vsub.f32 %v199_v21, %v200_v29 }
  0x81   :  { %v202_v35 = vand.u32 4294901760, %v201_v33 }
  0x85   :  { %v73_v38 = vpop.permute.xlu0 %72 }
  0xed   :  { %v68_v18 = vpop.permute.xlu1 %67 }
  0xee   :  { %v106_v19 = vand.u32 4294901760, %v68_v18 }
  0xf0   :  { %v185_v22 = vsub.f32 %v68_v18, %v106_v19  ;;  %2363 = vmatpush3.msra.mxu0 %v106_v19 }
  0xf1   :  { %v64_v23 = vpop.permute.xlu1 %63  ;;  %2364 = vmatprep.subr.mxu0 %v2649_v2 }
  0xf2   :  { %v109_v24 = vand.u32 4294901760, %v64_v23  ;;  %v186_v25 = vand.u32 4294901760, %v185_v22 }
  0xf4   :  { %v192_v27 = vsub.f32 %v64_v23, %v109_v24  ;;  %2365 = vmatpush3.msra.mxu0 %v109_v24  ;;  %v187_v28 = vsub.f32 %v185_v22, %v186_v25  ;;  %v574_v23 = vld [vmem:[%s3046_s5 + $0x8] sm:$0xff] }
  0xf5   :  { %2366 = vmatprep.subr.mxu0 %v2649_v2 }
  0xf6   :  { %v193_v30 = vand.u32 4294901760, %v192_v27  ;;  %2367 = vmatpush3.msra.mxu0 %v112_v17  ;;  %v188_v31 = vand.u32 4294901760, %v187_v28 }
  0xf7   :  { %2380 = vmatprep.subr.mxu0 %v2649_v2  ;;  %2369 = vmatmul.mubr.f32.vlgmr.msra.gmra.mxu0 %v151_v26 }
  0xf8   :  { %2372 = vmatpush3.msra.mxu1 %v188_v31  ;;  %2381 = vmatpush3.msra.mxu0 %v185_v22  ;;  %v194_v32 = vsub.f32 %v192_v27, %v193_v30  ;;  %v573_v22 = vld [vmem:[%s3046_s5] sm:$0xff] }
  0xf9   :  { %2382 = vmatprep.subr.mxu0 %v2649_v2  ;;  %2373 = vmatprep.subr.mxu1 %v2649_v2 }
  0xfa   :  { %2383 = vmatpush3.msra.mxu0 %v192_v27  ;;  %v195_v34 = vand.u32 4294901760, %v194_v32  ;;  %2386 = vmatprep.mubr.msk.f32.mxu0 %vm2650_vm2, %v2649_v2 }
  0xfb   :  { %2384 = vmatprep.subr.mxu0 %v2649_v2 }
  0xfc   :  { %2374 = vmatpush3.msra.mxu1 %v195_v34  ;;  %2385 = vmatpush3.msra.mxu0 %v199_v21 }
  0xfd   :  { %2375 = vmatprep.subr.mxu1 %v2649_v2  ;;  %2398 = vmatprep.subr.mxu0 %v2649_v2 }
  0xfe   :  { %2376 = vmatpush3.msra.mxu1 %v202_v35  ;;  %2387 = vmatmul.mubr.f32.vlgmr.msra.gmra.mxu0 %v148_v14 }
  0xff   :  { %2399 = vmatpush3.msra.mxu0 %v186_v25  ;;  %2378 = vmatmul.mubr.f32.vlgmr.msra.gmra.mxu1 %v2736_v12 }
 0x100   :  { %2389 = vmatprep.subr.mxu1 %v2649_v2  ;;  %2400 = vmatprep.subr.mxu0 %v2649_v2 }
 0x101   :  { %2390 = vmatpush3.msra.mxu1 %v106_v19  ;;  %2401 = vmatpush3.msra.mxu0 %v193_v30 }
 0x102   :  { %2391 = vmatprep.subr.mxu1 %v2649_v2  ;;  %2402 = vmatprep.subr.mxu0 %v2649_v2 }
 0x103   :  { %2392 = vmatpush3.msra.mxu1 %v109_v24  ;;  %2403 = vmatpush3.msra.mxu0 %v200_v29 }
 0x104   :  { %2393 = vmatprep.subr.mxu1 %v2649_v2  ;;  %2395 = vmatprep.mubr.msk.f32.mxu1 %vm2650_vm2, %v2649_v2 }
 0x105   :  { %2394 = vmatpush3.msra.mxu1 %v112_v17  ;;  %2404 = vmatprep.mubr.msk.f32.mxu0 %vm2650_vm2, %v2649_v2 }
 0x106   :  { %2396 = vmatmul.mubr.f32.vlgmr.msra.gmra.mxu1 %v149_v16  ;;  %2407 = vmatprep.subr.mxu1 %v2649_v2 }
 0x107   :  { %2408 = vmatpush3.msra.mxu1 %v106_v19  ;;  %2405 = vmatmul.mubr.f32.vlgmr.msra.gmra.mxu0 %v2736_v12 }
 0x108   :  { %2409 = vmatprep.subr.mxu1 %v2649_v2  ;;  %2413 = vmatprep.mubr.msk.f32.mxu1 %vm2650_vm2, %v2649_v2 }
 0x109   :  { %2410 = vmatpush3.msra.mxu1 %v109_v24  ;;  %v572_v24 = vld [vmem:[%s3045_s4 + $0x8] sm:$0xff] }
 0x10a   :  { %2411 = vmatprep.subr.mxu1 %v2649_v2  ;;  %v605_v25 = vsel %vm75_vm3, %v572_v24, 0 }
 0x10b   :  { %2412 = vmatpush3.msra.mxu1 %v112_v17  ;;  %v2802_v26 = vand.u32 4294901760, %v605_v25 }
 0x10c   :  { %2414 = vmatmul.mubr.f32.vlgmr.msra.gmra.mxu1 %v2736_v12  ;;  %v2777_v12 = vand.u32 4294901760, %v602_v11 }
 0x10d   :  { %v686_v28 = vsub.f32 %v605_v25, %v2802_v26 }
 0x10e   :  { %v2780_v14 = vsub.f32 %v602_v11, %v2777_v12  ;;  %2431 = vmatprep.mubr.f32.mxu1 %v2777_v12 }
 0x10f   :  { %v687_v30 = vand.u32 4294901760, %v686_v28 }
 0x110   :  { %v677_v15 = vand.u32 4294901760, %v2780_v14 }
 0x112   :  { %v678_v16 = vsub.f32 %v2780_v14, %v677_v15 }
 0x114   :  { %v679_v17 = vand.u32 4294901760, %v678_v16 }
 0x116   :  { %2422 = vmatprep.mubr.f32.mxu0 %v679_v17 }
 0x1b7   :  { %v153_v36 = vpop.f32.mrf.mxu0 }
 0x1b8   :  { %v154_v39 = vadd.f32 %v153_v36, %v73_v38 }
 0x1b9   :  { %v2370_v37 = vpop.f32.mrf.mxu0 }
 0x1ba   :  { %v688_v37 = vsub.f32 %v686_v28, %v687_v30 }
 0x1be   :  { %v317_v40 = vpop.f32.mrf.mxu0 }
 0x1bf   :  { %v239_v41 = vpop.f32.mrf.mxu1 }
 0x1c0   :  { %v240_v42 = vadd.f32 %v239_v41, %v154_v39  ;;  %v2388_v43 = vpop.f32.mrf.mxu0 }
 0x1c1   :  { %v2379_v44 = vpop.f32.mrf.mxu1 }
 0x1c2   :  { %v318_v45 = vadd.f32 %v317_v40, %v240_v42  ;;  %v689_v40 = vand.u32 4294901760, %v688_v37 }
 0x1c6   :  { %v393_v46 = vpop.f32.mrf.mxu1 }
 0x1c7   :  { %v394_v47 = vadd.f32 %v393_v46, %v318_v45  ;;  %v473_v48 = vpop.f32.mrf.mxu0 }
 0x1c8   :  { %v2397_v49 = vpop.f32.mrf.mxu1 }
 0x1c9   :  { %v2406_v50 = vpop.f32.mrf.mxu0  ;;  %v474_v51 = vadd.f32 %v473_v48, %v394_v47 }
 0x1cc   :  { %v547_v52 = vpop.f32.mrf.mxu1 }
 0x1cd   :  { %v548_v53 = vadd.f32 %v547_v52, %v474_v51 }
 0x1ce   :  { %v2415_v54 = vpop.f32.mrf.mxu1 }
 0x1cf   :  { %v554_v55 = vand.u32 2147483647, %v548_v53  ;;  %v551_v3 = vmax.f32 %v548_v53, 0.0  ;;  %vm552_vm5 = vcmp.ne.f32.partialorder %v548_v53, %v548_v53 }
 0x1d1   :  { %v555_v56 = vsub.f32 0.0, %v554_v55 }
 0x1d3   :  { %v556_v57 = vmul.f32 1.442695, %v555_v56 }
 0x1d5   :  { %2623 = vpow2.f32 %v556_v57 }
 0x1e2   :  { %v2624_v58 = vpop.eup %2623 }
 0x1e3   :  { %v558_v59 = vadd.f32 1.0, %v2624_v58  ;;  %v561_v60 = vmul.f32 -0.5, %v2624_v58  ;;  %v564_v62 = vand.u32 2147483647, %v2624_v58 }
 0x1e5   :  { %2625 = vlog2.f32 %v558_v59  ;;  %v562_v61 = vadd.f32 1.0, %v561_v60  ;;  %vm565_vm4 = vcmp.lt.f32.partialorder %v564_v62, 0.0004427343 }
 0x1e7   :  { %v563_v1 = vmul.f32 %v2624_v58, %v562_v61 }
 0x1f2   :  { %v2626_v63 = vpop.eup %2625 }
 0x1f3   :  { %v560_v0 = vmul.f32 0.6931472, %v2626_v63 }
 0x1f5   :  { %v566_v4 = vsel %vm565_vm4, %v563_v1, %v560_v0 }
 0x1f6   :  { %v567_v5 = vadd.f32 %v566_v4, %v551_v3 }
 0x1f8   :  { %v568_v7 = vsel %vm552_vm5, %v548_v53, %v567_v5 }
 0x1f9   :  { %2627 = vtanh.f32 %v568_v7 }
 0x206   :  { %v2628_v8 = vpop.eup %2627 }
 0x207   :  { %v570_v9 = vmul.f32 %v2628_v8, %v548_v53 }
 0x209   :  { %576 = vrot.lane.b32.xlu1 %v570_v9, %s2647_s15 }
 0x27b   :  { %v577_v18 = vpop.permute.xlu1 %576 }
 0x27c   :  { %v579_v19 = vsel %vm42_vm0, 0.0, %v577_v18 }
 0x27d   :  { %v580_v20 = vsel %vm44_vm1, %v579_v19, 0.0 }
 0x27e   :  { %v582_v21 = vmul.f32 %v580_v20, %v2724_v6  ;;  %584 = vrot.lane.b32.xlu0 %v580_v20, %s2652_s19  ;;  %v581_v27 = vmul.f32 %v2741_v13, %v580_v20 }
 0x280   :  { %588 = vrot.lane.b32.xlu1 %v582_v21, %s2651_s0  ;;  %v2806_v29 = vand.u32 4294901760, %v581_v27 }
 0x282   :  { %593 = vperm.xlu0 %2621, %v573_v22   ;;  %v737_v34 = vsub.f32 %v581_v27, %v2806_v29 }
 0x284   :  { %598 = vperm.xlu1 %2622, %v574_v23   ;;  %v738_v42 = vand.u32 4294901760, %v737_v34 }
 0x286   :  { %v739_v46 = vsub.f32 %v737_v34, %v738_v42 }
 0x288   :  { %v740_v48 = vand.u32 4294901760, %v739_v46 }
 0x2f0   :  { %v585_v31 = vpop.permute.xlu0 %584 }
 0x2f1   :  { %v637_v32 = vand.u32 4294901760, %v585_v31 }
 0x2f2   :  { %v589_v33 = vpop.permute.xlu1 %588 }
 0x2f3   :  { %v730_v35 = vsub.f32 %v585_v31, %v637_v32  ;;  %v634_v36 = vand.u32 4294901760, %v589_v33 }
 0x2f5   :  { %v723_v38 = vsub.f32 %v589_v33, %v634_v36  ;;  %2416 = vmatprep.subr.mxu0 %v634_v36  ;;  %v731_v39 = vand.u32 4294901760, %v730_v35 }
 0x2f6   :  { %2417 = vmatpush3.msra.mxu0 %v634_v36 }
 0x2f7   :  { %2418 = vmatprep.subr.mxu0 %v637_v32  ;;  %v724_v41 = vand.u32 4294901760, %v723_v38  ;;  %v732_v44 = vsub.f32 %v730_v35, %v731_v39 }
 0x2f8   :  { %2419 = vmatpush3.msra.mxu0 %v637_v32 }
 0x2f9   :  { %2420 = vmatprep.subr.mxu0 %v2806_v29  ;;  %v725_v43 = vsub.f32 %v723_v38, %v724_v41  ;;  %v733_v47 = vand.u32 4294901760, %v732_v44 }
 0x2fa   :  { %2421 = vmatpush3.msra.mxu0 %v2806_v29 }
 0x2fb   :  { %2423 = vmatmul.mubr.f32.vlgmr.msra.gmra.mxu0 %v689_v40  ;;  %2434 = vmatprep.subr.mxu0 %v723_v38  ;;  %v726_v45 = vand.u32 4294901760, %v725_v43 }
 0x2fc   :  { %2435 = vmatpush3.msra.mxu0 %v723_v38  ;;  %2440 = vmatprep.mubr.f32.mxu0 %v2780_v14 }
 0x2fd   :  { %2425 = vmatprep.subr.mxu1 %v726_v45  ;;  %2436 = vmatprep.subr.mxu0 %v730_v35  ;;  %v594_v54 = vpop.permute.xlu0 %593 }
 0x2fe   :  { %2426 = vmatpush3.msra.mxu1 %v726_v45  ;;  %2437 = vmatpush3.msra.mxu0 %v730_v35 }
 0x2ff   :  { %2427 = vmatprep.subr.mxu1 %v733_v47  ;;  %2438 = vmatprep.subr.mxu0 %v737_v34  ;;  %v599_v49 = vpop.permute.xlu1 %598 }
 0x300   :  { %2428 = vmatpush3.msra.mxu1 %v733_v47  ;;  %2439 = vmatpush3.msra.mxu0 %v737_v34 }
 0x301   :  { %2429 = vmatprep.subr.mxu1 %v740_v48  ;;  %2452 = vmatprep.subr.mxu0 %v724_v41 }
 0x302   :  { %2430 = vmatpush3.msra.mxu1 %v740_v48  ;;  %2441 = vmatmul.mubr.f32.vlgmr.msra.gmra.mxu0 %v686_v28 }
 0x303   :  { %2453 = vmatpush3.msra.mxu0 %v724_v41  ;;  %2432 = vmatmul.mubr.f32.vlgmr.msra.gmra.mxu1 %v2802_v26 }
 0x304   :  { %2443 = vmatprep.subr.mxu1 %v634_v36  ;;  %2454 = vmatprep.subr.mxu0 %v731_v39 }
 0x305   :  { %2444 = vmatpush3.msra.mxu1 %v634_v36  ;;  %2455 = vmatpush3.msra.mxu0 %v731_v39 }
 0x306   :  { %2445 = vmatprep.subr.mxu1 %v637_v32  ;;  %2456 = vmatprep.subr.mxu0 %v738_v42 }
 0x307   :  { %2446 = vmatpush3.msra.mxu1 %v637_v32  ;;  %2457 = vmatpush3.msra.mxu0 %v738_v42 }
 0x308   :  { %2447 = vmatprep.subr.mxu1 %v2806_v29  ;;  %2449 = vmatprep.mubr.f32.mxu1 %v677_v15 }
 0x309   :  { %2448 = vmatpush3.msra.mxu1 %v2806_v29  ;;  %2458 = vmatprep.mubr.f32.mxu0 %v2777_v12 }
 0x30a   :  { %2450 = vmatmul.mubr.f32.vlgmr.msra.gmra.mxu1 %v687_v30  ;;  %2461 = vmatprep.subr.mxu1 %v634_v36 }
 0x30b   :  { %2462 = vmatpush3.msra.mxu1 %v634_v36  ;;  %2459 = vmatmul.mubr.f32.vlgmr.msra.gmra.mxu0 %v2802_v26 }
 0x30c   :  { %2463 = vmatprep.subr.mxu1 %v637_v32  ;;  %2467 = vmatprep.mubr.f32.mxu1 %v2777_v12 }
 0x30d   :  { %2464 = vmatpush3.msra.mxu1 %v637_v32  ;;  %2470 = vmatprep.subr.mxu0 %v2649_v2 }
 0x30e   :  { %2465 = vmatprep.subr.mxu1 %v2806_v29  ;;  %2482 = vmatprep.mubr.msk.f32.mxu0 %vm2650_vm2, %v2649_v2 }
 0x30f   :  { %2466 = vmatpush3.msra.mxu1 %v2806_v29 }
 0x310   :  { %2468 = vmatmul.mubr.f32.vlgmr.msra.gmra.mxu1 %v2802_v26  ;;  %2485 = vmatprep.subr.mxu1 %v2649_v2 }
 0x311   :  { %2497 = vmatprep.mubr.msk.f32.mxu1 %vm2650_vm2, %v2649_v2 }
 0x3bb   :  { %v2424_v50 = vpop.f32.mrf.mxu0 }
 0x3bc   :  { %v692_v51 = vadd.f32 %v2424_v50, %v599_v49 }
 0x3bd   :  { %v681_v52 = vpop.f32.mrf.mxu0 }
 0x3be   :  { %v682_v57 = vadd.f32 %v681_v52, %v594_v54 }
 0x3c2   :  { %v2442_v56 = vpop.f32.mrf.mxu0 }
 0x3c3   :  { %v2433_v53 = vpop.f32.mrf.mxu1 }
 0x3c4   :  { %v784_v55 = vadd.f32 %v2433_v53, %v692_v51  ;;  %v861_v61 = vpop.f32.mrf.mxu0 }
 0x3c5   :  { %v777_v58 = vpop.f32.mrf.mxu1 }
 0x3c6   :  { %v778_v59 = vadd.f32 %v777_v58, %v682_v57  ;;  %v869_v60 = vadd.f32 %v2442_v56, %v784_v55  ;;  %v1163_v56 = vld [vmem:[%s3047_s7] sm:$0xff] }
 0x3c7   :  { %v1162_v57 = vld [vmem:[%s3048_s6] sm:$0xff] }
 0x3c8   :  { %v862_v63 = vadd.f32 %v861_v61, %v778_v59  ;;  %v1203_v58 = vsel %vm1201_vm10, %v1162_v57, 0 }
 0x3c9   :  { %v2847_v59 = vand.u32 4294901760, %v1203_v58 }
 0x3ca   :  { %v2451_v62 = vpop.f32.mrf.mxu1 }
 0x3cb   :  { %v953_v0 = vadd.f32 %v2451_v62, %v869_v60  ;;  %v2460_v1 = vpop.f32.mrf.mxu0  ;;  %v2852_v62 = vsub.f32 %v1203_v58, %v2847_v59 }
 0x3cc   :  { %v944_v3 = vpop.f32.mrf.mxu1 }
 0x3cd   :  { %v945_v4 = vadd.f32 %v944_v3, %v862_v63  ;;  %v1032_v5 = vpop.f32.mrf.mxu0  ;;  %v1039_v7 = vadd.f32 %v2460_v1, %v953_v0 }
 0x3cf   :  { %v1033_v9 = vadd.f32 %v1032_v5, %v945_v4  ;;  %v1278_v5 = vand.u32 4294901760, %v2852_v62 }
 0x3d0   :  { %v2469_v8 = vpop.f32.mrf.mxu1 }
 0x3d1   :  { %v1119_v10 = vadd.f32 %v2469_v8, %v1039_v7 }
 0x3d2   :  { %v1112_v11 = vpop.f32.mrf.mxu1 }
 0x3d3   :  { %v1129_v12 = vand.u32 2147483647, %v1119_v10  ;;  %v1113_v14 = vadd.f32 %v1112_v11, %v1033_v9  ;;  %v1123_v34 = vmax.f32 %v1119_v10, 0.0  ;;  %vm1125_vm8 = vcmp.ne.f32.partialorder %v1119_v10, %v1119_v10 }
 0x3d5   :  { %v1131_v15 = vsub.f32 0.0, %v1129_v12  ;;  %v1128_v16 = vand.u32 2147483647, %v1113_v14  ;;  %v1122_v39 = vmax.f32 %v1113_v14, 0.0  ;;  %vm1124_vm9 = vcmp.ne.f32.partialorder %v1113_v14, %v1113_v14 }
 0x3d7   :  { %v1134_v17 = vmul.f32 1.442695, %v1131_v15  ;;  %v1130_v18 = vsub.f32 0.0, %v1128_v16 }
 0x3d9   :  { %2629 = vpow2.f32 %v1134_v17  ;;  %v1132_v19 = vmul.f32 1.442695, %v1130_v18  ;;  %v1279_v17 = vsub.f32 %v2852_v62, %v1278_v5 }
 0x3db   :  { %2631 = vpow2.f32 %v1132_v19 }
 0x3e6   :  { %v2630_v20 = vpop.eup %2629 }
 0x3e7   :  { %v1145_v21 = vadd.f32 1.0, %v2630_v20  ;;  %v1148_v24 = vmul.f32 -0.5, %v2630_v20  ;;  %v1151_v27 = vand.u32 2147483647, %v2630_v20 }
 0x3e8   :  { %v2632_v22 = vpop.eup %2631 }
 0x3e9   :  { %2633 = vlog2.f32 %v1145_v21  ;;  %v1136_v23 = vadd.f32 1.0, %v2632_v22  ;;  %v1139_v25 = vmul.f32 -0.5, %v2632_v22  ;;  %v1149_v26 = vadd.f32 1.0, %v1148_v24 }
 0x3ea   :  { %v1142_v30 = vand.u32 2147483647, %v2632_v22  ;;  %vm1152_vm6 = vcmp.lt.f32.partialorder %v1151_v27, 0.0004427343  ;;  %v1280_v27 = vand.u32 4294901760, %v1279_v17 }
 0x3eb   :  { %2635 = vlog2.f32 %v1136_v23  ;;  %v1140_v28 = vadd.f32 1.0, %v1139_v25  ;;  %v1150_v32 = vmul.f32 %v2630_v20, %v1149_v26 }
 0x3ec   :  { %vm1143_vm7 = vcmp.lt.f32.partialorder %v1142_v30, 0.0004427343 }
 0x3ed   :  { %v1141_v37 = vmul.f32 %v2632_v22, %v1140_v28 }
 0x3f6   :  { %v2634_v29 = vpop.eup %2633 }
 0x3f7   :  { %v1147_v31 = vmul.f32 0.6931472, %v2634_v29 }
 0x3f8   :  { %v2636_v33 = vpop.eup %2635 }
 0x3f9   :  { %v1153_v35 = vsel %vm1152_vm6, %v1150_v32, %v1147_v31  ;;  %v1138_v36 = vmul.f32 0.6931472, %v2636_v33 }
 0x3fa   :  { %v1155_v38 = vadd.f32 %v1153_v35, %v1123_v34 }
 0x3fb   :  { %v1144_v40 = vsel %vm1143_vm7, %v1141_v37, %v1138_v36 }
 0x3fc   :  { %v1157_v41 = vsel %vm1125_vm8, %v1119_v10, %v1155_v38  ;;  %v1154_v42 = vadd.f32 %v1144_v40, %v1122_v39 }
 0x3fd   :  { %2637 = vtanh.f32 %v1157_v41 }
 0x3fe   :  { %v1156_v43 = vsel %vm1124_vm9, %v1113_v14, %v1154_v42 }
 0x3ff   :  { %2639 = vtanh.f32 %v1156_v43 }
 0x40a   :  { %v2638_v44 = vpop.eup %2637 }
 0x40b   :  { %v1161_v45 = vmul.f32 %v2638_v44, %v1119_v10 }
 0x40c   :  { %v2640_v46 = vpop.eup %2639 }
 0x40d   :  { %1168 = vrot.lane.b32.xlu1 %v1161_v45, %s2647_s15  ;;  %v1160_v47 = vmul.f32 %v2640_v46, %v1113_v14 }
 0x40f   :  { %1166 = vrot.lane.b32.xlu0 %v1160_v47, %s2647_s15 }
 0x47f   :  { %v1169_v48 = vpop.permute.xlu1 %1168 }
 0x480   :  { %v1173_v49 = vsel %vm42_vm0, 0.0, %v1169_v48 }
 0x481   :  { %v1175_v50 = vsel %vm44_vm1, %v1173_v49, 0.0  ;;  %v1167_v51 = vpop.permute.xlu0 %1166 }
 0x482   :  { %v1179_v52 = vmul.f32 %v1175_v50, %v2724_v6  ;;  %v1172_v53 = vsel %vm42_vm0, 0.0, %v1167_v51  ;;  %v1177_v60 = vmul.f32 %v2741_v13, %v1175_v50 }
 0x483   :  { %v1174_v54 = vsel %vm44_vm1, %v1172_v53, 0.0 }
 0x484   :  { %v1178_v55 = vmul.f32 %v1174_v54, %v2724_v6  ;;  %1192 = vrot.lane.b32.xlu1 %v1179_v52, %s2651_s0  ;;  %v1176_v61 = vmul.f32 %v2741_v13, %v1174_v54  ;;  %v2854_v63 = vand.u32 4294901760, %v1177_v60 }
 0x486   :  { %1190 = vrot.lane.b32.xlu0 %v1178_v55, %s2651_s0  ;;  %v2858_v3 = vand.u32 4294901760, %v1176_v61  ;;  %v2868_v9 = vsub.f32 %v1177_v60, %v2854_v63 }
 0x488   :  { %1184 = vrot.lane.b32.xlu1 %v1175_v50, %s2652_s19  ;;  %v2879_v15 = vsub.f32 %v1176_v61, %v2858_v3  ;;  %v1337_v22 = vand.u32 4294901760, %v2868_v9 }
 0x48a   :  { %1182 = vrot.lane.b32.xlu0 %v1174_v54, %s2652_s19  ;;  %v1344_v31 = vand.u32 4294901760, %v2879_v15  ;;  %v1338_v34 = vsub.f32 %v2868_v9, %v1337_v22 }
 0x48c   :  { %1198 = vperm.xlu1 %2622, %v1163_v56   ;;  %v1345_v36 = vsub.f32 %v2879_v15, %v1344_v31  ;;  %v1339_v37 = vand.u32 4294901760, %v1338_v34 }
 0x48e   :  { %v1346_v38 = vand.u32 4294901760, %v1345_v36 }
 0x4f6   :  { %v1193_v0 = vpop.permute.xlu1 %1192 }
 0x4f7   :  { %v2856_v1 = vand.u32 4294901760, %v1193_v0 }
 0x4f8   :  { %v1191_v4 = vpop.permute.xlu0 %1190 }
 0x4f9   :  { %v2862_v7 = vsub.f32 %v1193_v0, %v2856_v1  ;;  %v2864_v8 = vand.u32 4294901760, %v1191_v4  ;;  %2471 = vmatpush3.msra.mxu0 %v2856_v1 }
 0x4fa   :  { %2472 = vmatprep.subr.mxu0 %v2649_v2  ;;  %v1185_v10 = vpop.permute.xlu1 %1184 }
 0x4fb   :  { %v1309_v11 = vand.u32 4294901760, %v2862_v7  ;;  %v2873_v12 = vsub.f32 %v1191_v4, %v2864_v8  ;;  %v2875_v14 = vand.u32 4294901760, %v1185_v10  ;;  %2473 = vmatpush3.msra.mxu0 %v2864_v8 }
 0x4fc   :  { %2474 = vmatprep.subr.mxu0 %v2649_v2  ;;  %v1183_v16 = vpop.permute.xlu0 %1182 }
 0x4fd   :  { %v1310_v18 = vsub.f32 %v2862_v7, %v1309_v11  ;;  %v1316_v19 = vand.u32 4294901760, %v2873_v12  ;;  %v2890_v20 = vsub.f32 %v1185_v10, %v2875_v14  ;;  %v2892_v21 = vand.u32 4294901760, %v1183_v16  ;;  %2475 = vmatpush3.msra.mxu0 %v2875_v14 }
 0x4fe   :  { %2476 = vmatprep.subr.mxu0 %v2649_v2 }
 0x4ff   :  { %v1311_v23 = vand.u32 4294901760, %v1310_v18  ;;  %v1317_v24 = vsub.f32 %v2873_v12, %v1316_v19  ;;  %v1323_v25 = vand.u32 4294901760, %v2890_v20  ;;  %v2902_v26 = vsub.f32 %v1183_v16, %v2892_v21  ;;  %2477 = vmatpush3.msra.mxu0 %v2892_v21  ;;  %v1737_v18 = vld [vmem:[%s3049_s9] sm:$0xff] }
 0x500   :  { %2478 = vmatprep.subr.mxu0 %v2649_v2 }
 0x501   :  { %v1318_v28 = vand.u32 4294901760, %v1317_v24  ;;  %v1324_v29 = vsub.f32 %v2890_v20, %v1323_v25  ;;  %v1330_v30 = vand.u32 4294901760, %v2902_v26  ;;  %2479 = vmatpush3.msra.mxu0 %v2854_v63  ;;  %2486 = vmatpush3.msra.mxu1 %v1311_v23 }
 0x502   :  { %2480 = vmatprep.subr.mxu0 %v2649_v2  ;;  %2487 = vmatprep.subr.mxu1 %v2649_v2 }
 0x503   :  { %v1325_v32 = vand.u32 4294901760, %v1324_v29  ;;  %v1331_v33 = vsub.f32 %v2902_v26, %v1330_v30  ;;  %2481 = vmatpush3.msra.mxu0 %v2858_v3  ;;  %2488 = vmatpush3.msra.mxu1 %v1318_v28 }
 0x504   :  { %2483 = vmatmul.mubr.f32.vlgmr.msra.gmra.mxu0 %v1280_v27  ;;  %2489 = vmatprep.subr.mxu1 %v2649_v2 }
 0x505   :  { %v1332_v35 = vand.u32 4294901760, %v1331_v33  ;;  %2500 = vmatprep.subr.mxu0 %v2649_v2  ;;  %2490 = vmatpush3.msra.mxu1 %v1325_v32 }
 0x506   :  { %2501 = vmatpush3.msra.mxu0 %v2862_v7  ;;  %2491 = vmatprep.subr.mxu1 %v2649_v2 }
 0x507   :  { %2502 = vmatprep.subr.mxu0 %v2649_v2  ;;  %2492 = vmatpush3.msra.mxu1 %v1332_v35  ;;  %v1199_v47 = vpop.permute.xlu1 %1198 }
 0x508   :  { %2503 = vmatpush3.msra.mxu0 %v2873_v12  ;;  %2493 = vmatprep.subr.mxu1 %v2649_v2 }
 0x509   :  { %2504 = vmatprep.subr.mxu0 %v2649_v2  ;;  %2494 = vmatpush3.msra.mxu1 %v1339_v37 }
 0x50a   :  { %2505 = vmatpush3.msra.mxu0 %v2890_v20  ;;  %2495 = vmatprep.subr.mxu1 %v2649_v2 }
 0x50b   :  { %2506 = vmatprep.subr.mxu0 %v2649_v2  ;;  %2496 = vmatpush3.msra.mxu1 %v1346_v38 }
 0x50c   :  { %2507 = vmatpush3.msra.mxu0 %v2902_v26  ;;  %2498 = vmatmul.mubr.f32.vlgmr.msra.gmra.mxu1 %v2847_v59 }
 0x50d   :  { %2508 = vmatprep.subr.mxu0 %v2649_v2  ;;  %2515 = vmatprep.subr.mxu1 %v2649_v2 }
 0x50e   :  { %2509 = vmatpush3.msra.mxu0 %v2868_v9  ;;  %2516 = vmatpush3.msra.mxu1 %v2856_v1 }
 0x50f   :  { %2510 = vmatprep.subr.mxu0 %v2649_v2  ;;  %2517 = vmatprep.subr.mxu1 %v2649_v2 }
 0x510   :  { %2511 = vmatpush3.msra.mxu0 %v2879_v15  ;;  %2512 = vmatprep.mubr.msk.f32.mxu0 %vm2650_vm2, %v2649_v2 }
 0x511   :  { %2518 = vmatpush3.msra.mxu1 %v2864_v8  ;;  %2513 = vmatmul.mubr.f32.vlgmr.msra.gmra.mxu0 %v2852_v62 }
 0x512   :  { %2519 = vmatprep.subr.mxu1 %v2649_v2  ;;  %2530 = vmatprep.subr.mxu0 %v2649_v2 }
 0x513   :  { %2520 = vmatpush3.msra.mxu1 %v2875_v14  ;;  %2531 = vmatpush3.msra.mxu0 %v1309_v11 }
 0x514   :  { %2521 = vmatprep.subr.mxu1 %v2649_v2  ;;  %2532 = vmatprep.subr.mxu0 %v2649_v2 }
 0x515   :  { %2522 = vmatpush3.msra.mxu1 %v2892_v21  ;;  %2533 = vmatpush3.msra.mxu0 %v1316_v19  ;;  %v1736_v19 = vld [vmem:[%s3050_s8] sm:$0xff] }
 0x516   :  { %2523 = vmatprep.subr.mxu1 %v2649_v2  ;;  %2534 = vmatprep.subr.mxu0 %v2649_v2  ;;  %v1760_v20 = vsel %vm75_vm3, %v1736_v19, 0 }
 0x517   :  { %2524 = vmatpush3.msra.mxu1 %v2854_v63  ;;  %2535 = vmatpush3.msra.mxu0 %v1323_v25 }
 0x518   :  { %2525 = vmatprep.subr.mxu1 %v2649_v2  ;;  %2536 = vmatprep.subr.mxu0 %v2649_v2 }
 0x519   :  { %2526 = vmatpush3.msra.mxu1 %v2858_v3  ;;  %2527 = vmatprep.mubr.msk.f32.mxu1 %vm2650_vm2, %v2649_v2 }
 0x51a   :  { %2537 = vmatpush3.msra.mxu0 %v1330_v30  ;;  %2528 = vmatmul.mubr.f32.vlgmr.msra.gmra.mxu1 %v1278_v5 }
 0x51b   :  { %2538 = vmatprep.subr.mxu0 %v2649_v2  ;;  %2545 = vmatprep.subr.mxu1 %v2649_v2 }
 0x51c   :  { %2539 = vmatpush3.msra.mxu0 %v1337_v22  ;;  %2546 = vmatpush3.msra.mxu1 %v2856_v1 }
 0x51d   :  { %2540 = vmatprep.subr.mxu0 %v2649_v2  ;;  %2547 = vmatprep.subr.mxu1 %v2649_v2 }
 0x51e   :  { %2541 = vmatpush3.msra.mxu0 %v1344_v31  ;;  %2542 = vmatprep.mubr.msk.f32.mxu0 %vm2650_vm2, %v2649_v2 }
 0x51f   :  { %2548 = vmatpush3.msra.mxu1 %v2864_v8  ;;  %2543 = vmatmul.mubr.f32.vlgmr.msra.gmra.mxu0 %v2847_v59 }
 0x520   :  { %2549 = vmatprep.subr.mxu1 %v2649_v2  ;;  %2557 = vmatprep.mubr.msk.f32.mxu1 %vm2650_vm2, %v2649_v2 }
 0x521   :  { %2550 = vmatpush3.msra.mxu1 %v2875_v14  ;;  %2560 = vmatprep.subr.mxu0 %v2649_v2 }
 0x522   :  { %2551 = vmatprep.subr.mxu1 %v2649_v2  ;;  %2566 = vmatprep.mubr.msk.f32.mxu0 %vm2650_vm2, %v2649_v2 }
 0x523   :  { %2552 = vmatpush3.msra.mxu1 %v2892_v21  ;;  %v3007_v21 = vand.u32 4294901760, %v1760_v20 }
 0x524   :  { %2553 = vmatprep.subr.mxu1 %v2649_v2 }
 0x525   :  { %2554 = vmatpush3.msra.mxu1 %v2854_v63  ;;  %v1831_v22 = vsub.f32 %v1760_v20, %v3007_v21 }
 0x526   :  { %2555 = vmatprep.subr.mxu1 %v2649_v2 }
 0x527   :  { %2556 = vmatpush3.msra.mxu1 %v2858_v3  ;;  %v1832_v23 = vand.u32 4294901760, %v1831_v22 }
 0x528   :  { %2558 = vmatmul.mubr.f32.vlgmr.msra.gmra.mxu1 %v2847_v59  ;;  %2569 = vmatprep.subr.mxu1 %v2649_v2 }
 0x529   :  { %2575 = vmatprep.mubr.msk.f32.mxu1 %vm2650_vm2, %v2649_v2  ;;  %v1833_v28 = vsub.f32 %v1831_v22, %v1832_v23 }
 0x52b   :  { %v1834_v34 = vand.u32 4294901760, %v1833_v28 }
 0x5c4   :  { %v1282_v39 = vpop.f32.mrf.mxu0 }
 0x5c5   :  { %v1283_v48 = vadd.f32 %v1282_v39, %v1199_v47 }
 0x5c6   :  { %v2484_v40 = vpop.f32.mrf.mxu0 }
 0x5cc   :  { %v1383_v41 = vpop.f32.mrf.mxu1 }
 0x5cd   :  { %v1384_v50 = vadd.f32 %v1383_v41, %v1283_v48 }
 0x5ce   :  { %v2499_v42 = vpop.f32.mrf.mxu1 }
 0x5d1   :  { %v1467_v43 = vpop.f32.mrf.mxu0 }
 0x5d2   :  { %v1468_v52 = vadd.f32 %v1467_v43, %v1384_v50 }
 0x5d3   :  { %v2514_v44 = vpop.f32.mrf.mxu0 }
 0x5da   :  { %v1546_v45 = vpop.f32.mrf.mxu1 }
 0x5db   :  { %v1547_v53 = vadd.f32 %v1546_v45, %v1468_v52 }
 0x5dc   :  { %v2529_v46 = vpop.f32.mrf.mxu1 }
 0x5df   :  { %v1635_v49 = vpop.f32.mrf.mxu0 }
 0x5e0   :  { %v1636_v54 = vadd.f32 %v1635_v49, %v1547_v53 }
 0x5e1   :  { %v2544_v51 = vpop.f32.mrf.mxu0 }
 0x5e8   :  { %v1712_v55 = vpop.f32.mrf.mxu1 }
 0x5e9   :  { %v1713_v56 = vadd.f32 %v1712_v55, %v1636_v54 }
 0x5ea   :  { %v2559_v57 = vpop.f32.mrf.mxu1 }
 0x5eb   :  { %v1719_v58 = vand.u32 2147483647, %v1713_v56  ;;  %v1716_v7 = vmax.f32 %v1713_v56, 0.0  ;;  %vm1717_vm12 = vcmp.ne.f32.partialorder %v1713_v56, %v1713_v56 }
 0x5ed   :  { %v1720_v59 = vsub.f32 0.0, %v1719_v58 }
 0x5ef   :  { %v1721_v60 = vmul.f32 1.442695, %v1720_v59 }
 0x5f1   :  { %2641 = vpow2.f32 %v1721_v60 }
 0x5fe   :  { %v2642_v61 = vpop.eup %2641 }
 0x5ff   :  { %v1723_v62 = vadd.f32 1.0, %v2642_v61  ;;  %v1726_v63 = vmul.f32 -0.5, %v2642_v61  ;;  %v1729_v1 = vand.u32 2147483647, %v2642_v61 }
 0x601   :  { %2643 = vlog2.f32 %v1723_v62  ;;  %v1727_v0 = vadd.f32 1.0, %v1726_v63  ;;  %vm1730_vm11 = vcmp.lt.f32.partialorder %v1729_v1, 0.0004427343 }
 0x603   :  { %v1728_v5 = vmul.f32 %v2642_v61, %v1727_v0 }
 0x60e   :  { %v2644_v3 = vpop.eup %2643 }
 0x60f   :  { %v1725_v4 = vmul.f32 0.6931472, %v2644_v3 }
 0x611   :  { %v1731_v8 = vsel %vm1730_vm11, %v1728_v5, %v1725_v4 }
 0x612   :  { %v1732_v9 = vadd.f32 %v1731_v8, %v1716_v7 }
 0x614   :  { %v1733_v10 = vsel %vm1717_vm12, %v1713_v56, %v1732_v9 }
 0x615   :  { %2645 = vtanh.f32 %v1733_v10 }
 0x622   :  { %v2646_v11 = vpop.eup %2645 }
 0x623   :  { %v1735_v12 = vmul.f32 %v2646_v11, %v1713_v56 }
 0x625   :  { %1739 = vrot.lane.b32.xlu0 %v1735_v12, %s2647_s15 }
 0x697   :  { %v1740_v14 = vpop.permute.xlu0 %1739 }
 0x698   :  { %v1742_v15 = vsel %vm42_vm0, 0.0, %v1740_v14 }
 0x699   :  { %v1743_v16 = vsel %vm44_vm1, %v1742_v15, 0.0 }
 0x69a   :  { %v1745_v17 = vmul.f32 %v1743_v16, %v2724_v6  ;;  %1747 = vrot.lane.b32.xlu0 %v1743_v16, %s2652_s19  ;;  %v1744_v6 = vmul.f32 %v2741_v13, %v1743_v16 }
 0x69c   :  { %1751 = vrot.lane.b32.xlu1 %v1745_v17, %s2651_s0  ;;  %v1795_v24 = vand.u32 4294901760, %v1744_v6 }
 0x69e   :  { %v1882_v29 = vsub.f32 %v1744_v6, %v1795_v24 }
 0x6a0   :  { %1756 = vperm.xlu1 %2622, %v1737_v18   ;;  %v1883_v36 = vand.u32 4294901760, %v1882_v29 }
 0x6a2   :  { %v1884_v39 = vsub.f32 %v1882_v29, %v1883_v36 }
 0x6a4   :  { %v1885_v41 = vand.u32 4294901760, %v1884_v39 }
 0x70c   :  { %v1748_v25 = vpop.permute.xlu0 %1747 }
 0x70d   :  { %v1792_v26 = vand.u32 4294901760, %v1748_v25 }
 0x70e   :  { %v1752_v27 = vpop.permute.xlu1 %1751 }
 0x70f   :  { %v1875_v30 = vsub.f32 %v1748_v25, %v1792_v26  ;;  %v1789_v31 = vand.u32 4294901760, %v1752_v27 }
 0x711   :  { %v1876_v32 = vand.u32 4294901760, %v1875_v30  ;;  %v1868_v33 = vsub.f32 %v1752_v27, %v1789_v31  ;;  %2561 = vmatpush3.msra.mxu0 %v1789_v31 }
 0x712   :  { %2562 = vmatprep.subr.mxu0 %v2649_v2 }
 0x713   :  { %v1869_v35 = vand.u32 4294901760, %v1868_v33  ;;  %2563 = vmatpush3.msra.mxu0 %v1792_v26  ;;  %v1877_v13 = vsub.f32 %v1875_v30, %v1876_v32 }
 0x714   :  { %2564 = vmatprep.subr.mxu0 %v2649_v2 }
 0x715   :  { %v1870_v37 = vsub.f32 %v1868_v33, %v1869_v35  ;;  %2565 = vmatpush3.msra.mxu0 %v1795_v24  ;;  %v1878_v40 = vand.u32 4294901760, %v1877_v13 }
 0x716   :  { %2567 = vmatmul.mubr.f32.vlgmr.msra.gmra.mxu0 %v1834_v34  ;;  %2578 = vmatprep.subr.mxu0 %v2649_v2 }
 0x717   :  { %v1871_v38 = vand.u32 4294901760, %v1870_v37  ;;  %2579 = vmatpush3.msra.mxu0 %v1868_v33  ;;  %2584 = vmatprep.mubr.msk.f32.mxu0 %vm2650_vm2, %v2649_v2 }
 0x718   :  { %2580 = vmatprep.subr.mxu0 %v2649_v2 }
 0x719   :  { %2570 = vmatpush3.msra.mxu1 %v1871_v38  ;;  %2581 = vmatpush3.msra.mxu0 %v1875_v30 }
 0x71a   :  { %2571 = vmatprep.subr.mxu1 %v2649_v2  ;;  %2582 = vmatprep.subr.mxu0 %v2649_v2 }
 0x71b   :  { %2572 = vmatpush3.msra.mxu1 %v1878_v40  ;;  %2583 = vmatpush3.msra.mxu0 %v1882_v29  ;;  %v1757_v44 = vpop.permute.xlu1 %1756 }
 0x71c   :  { %2573 = vmatprep.subr.mxu1 %v2649_v2  ;;  %2596 = vmatprep.subr.mxu0 %v2649_v2 }
 0x71d   :  { %2574 = vmatpush3.msra.mxu1 %v1885_v41  ;;  %2585 = vmatmul.mubr.f32.vlgmr.msra.gmra.mxu0 %v1831_v22 }
 0x71e   :  { %2597 = vmatpush3.msra.mxu0 %v1869_v35  ;;  %2576 = vmatmul.mubr.f32.vlgmr.msra.gmra.mxu1 %v3007_v21 }
 0x71f   :  { %2587 = vmatprep.subr.mxu1 %v2649_v2  ;;  %2598 = vmatprep.subr.mxu0 %v2649_v2 }
 0x720   :  { %2588 = vmatpush3.msra.mxu1 %v1789_v31  ;;  %2599 = vmatpush3.msra.mxu0 %v1876_v32 }
 0x721   :  { %2589 = vmatprep.subr.mxu1 %v2649_v2  ;;  %2600 = vmatprep.subr.mxu0 %v2649_v2 }
 0x722   :  { %2590 = vmatpush3.msra.mxu1 %v1792_v26  ;;  %2601 = vmatpush3.msra.mxu0 %v1883_v36 }
 0x723   :  { %2591 = vmatprep.subr.mxu1 %v2649_v2  ;;  %2593 = vmatprep.mubr.msk.f32.mxu1 %vm2650_vm2, %v2649_v2 }
 0x724   :  { %2592 = vmatpush3.msra.mxu1 %v1795_v24  ;;  %2602 = vmatprep.mubr.msk.f32.mxu0 %vm2650_vm2, %v2649_v2 }
 0x725   :  { %2594 = vmatmul.mubr.f32.vlgmr.msra.gmra.mxu1 %v1832_v23  ;;  %2605 = vmatprep.subr.mxu1 %v2649_v2 }
 0x726   :  { %2606 = vmatpush3.msra.mxu1 %v1789_v31  ;;  %2603 = vmatmul.mubr.f32.vlgmr.msra.gmra.mxu0 %v3007_v21 }
 0x727   :  { %2607 = vmatprep.subr.mxu1 %v2649_v2  ;;  %2611 = vmatprep.mubr.msk.f32.mxu1 %vm2650_vm2, %v2649_v2 }
 0x728   :  { %2608 = vmatpush3.msra.mxu1 %v1792_v26 }
 0x729   :  { %2609 = vmatprep.subr.mxu1 %v2649_v2 }
 0x72a   :  { %2610 = vmatpush3.msra.mxu1 %v1795_v24 }
 0x72b   :  { %2612 = vmatmul.mubr.f32.vlgmr.msra.gmra.mxu1 %v3007_v21 }
 0x7d6   :  { %v1836_v42 = vpop.f32.mrf.mxu0 }
 0x7d7   :  { %v1837_v46 = vadd.f32 %v1836_v42, %v1757_v44 }
 0x7d8   :  { %v2568_v43 = vpop.f32.mrf.mxu0 }
 0x7dd   :  { %v2000_v45 = vpop.f32.mrf.mxu0 }
 0x7de   :  { %v1922_v47 = vpop.f32.mrf.mxu1 }
 0x7df   :  { %v2586_v48 = vpop.f32.mrf.mxu0  ;;  %v1923_v49 = vadd.f32 %v1922_v47, %v1837_v46 }
 0x7e0   :  { %v2577_v50 = vpop.f32.mrf.mxu1 }
 0x7e1   :  { %v2001_v51 = vadd.f32 %v2000_v45, %v1923_v49 }
 0x7e5   :  { %v2076_v52 = vpop.f32.mrf.mxu1 }
 0x7e6   :  { %v2077_v53 = vadd.f32 %v2076_v52, %v2001_v51  ;;  %v2156_v54 = vpop.f32.mrf.mxu0 }
 0x7e7   :  { %v2595_v55 = vpop.f32.mrf.mxu1 }
 0x7e8   :  { %v2604_v56 = vpop.f32.mrf.mxu0  ;;  %v2157_v57 = vadd.f32 %v2156_v54, %v2077_v53 }
 0x7eb   :  { %v2230_v2 = vpop.f32.mrf.mxu1 }
 0x7ec   :  { %v2231_v58 = vadd.f32 %v2230_v2, %v2157_v57 }
 0x7ed   :  { %v2613_v59 = vpop.f32.mrf.mxu1 }
 0x7ee   :  { %2235 = vst.msk [vmem:[%s3051_s10] sm:$0xff] %vm2234_vm13, %v2231_v58 }

</bundles_post_ra>
